<compile_context>
chip_gen: v5e
topology: v5e:2x2
jax: 0.10.0
libtpu: 0.0.40
codegen_flags: <defaults>
</compile_context>

<pallas_src>
import jax
import jax.numpy as jnp
from jax.experimental import pallas as pl
from jax.experimental.pallas import tpu as pltpu


def _round_up(x, m):
    return (x + m - 1) // m * m


def _pick_tn(t):
    """Time-axis (lane) tile.

    Small T: one full-extent block (valid even when T is not a 128-multiple,
    since it equals the full array dim).  Large T: lane-dense 128-multiples.
    """
    if t <= 1024:
        return t
    for cand in (1024, 512, 384, 256, 128):
        if t % cand == 0:
            return cand
    return 128  # T gets padded up to a multiple of 128 in the wrapper


def fold_params(params):
    """Fold the activation-free 5-layer chain into one affine map (f32, exact)."""
    w = params[0][0].astype(jnp.float32)          # (z_dim, 128)
    b = params[0][1].astype(jnp.float32)          # (128,)
    for wi, bi in params[1:]:
        wi = wi.astype(jnp.float32)
        w = w @ wi
        b = b @ wi + bi.astype(jnp.float32)
    return w, b                                   # (z_dim, out_dim), (out_dim,)


def _wrench_decoder_kernel(x_ref, wt_ref, b_ref, o_ref):
    """y[:, t] = tanh(W_total^T @ x[:, t] + b_total) for one (batch, time-tile)."""
    h = x_ref[0]                                                    # (C, tn) f32
    y = jnp.dot(wt_ref[...], h, preferred_element_type=jnp.float32)  # (out, tn)
    o_ref[0] = jnp.tanh(y + b_ref[...]).astype(o_ref.dtype)


def wrench_decoder_forward(params, wrench_feature):
    """Mirrors WrenchDecoderV2.forward.

    wrench_feature: (B, z_dim, T) in PyTorch Conv1d layout.
    returns: (B, wrench_dim, T), tanh-squashed, f32.
    """
    B, C, T = wrench_feature.shape

    w_total, b_total = fold_params(params)        # tiny f32 fold, exact
    out_dim = w_total.shape[1]
    wt = w_total.T                                # (out_dim, C): channels on lanes
    bias = b_total.reshape(out_dim, 1)            # broadcasts over the time lanes

    x = wrench_feature.astype(jnp.float32)
    tn = _pick_tn(T)
    T_pad = _round_up(T, tn)
    if T_pad != T:
        x = jnp.pad(x, ((0, 0), (0, 0), (0, T_pad - T)))

    grid = (B, T_pad // tn)

    cost = pl.CostEstimate(
        flops=2 * B * T_pad * C * out_dim,
        transcendentals=B * T_pad * out_dim,
        bytes_accessed=(x.size * 4 + wt.size * 4 + bias.size * 4
                        + B * out_dim * T_pad * 4),
    )

    y = pl.pallas_call(
        _wrench_decoder_kernel,
        out_shape=jax.ShapeDtypeStruct((B, out_dim, T_pad), jnp.float32),
        grid=grid,
        in_specs=[
            pl.BlockSpec((1, C, tn), lambda b, t: (b, 0, t)),      # input tile
            pl.BlockSpec((out_dim, C), lambda b, t: (0, 0)),       # folded weight (resident)
            pl.BlockSpec((out_dim, 1), lambda b, t: (0, 0)),       # folded bias (resident)
        ],
        out_specs=pl.BlockSpec((1, out_dim, tn), lambda b, t: (b, 0, t)),
        compiler_params=pltpu.CompilerParams(
            dimension_semantics=("parallel", "parallel"),
            vmem_limit_bytes=32 * 1024 * 1024,
        ),
        cost_estimate=cost,
    )(x, wt, bias)

    if T_pad != T:
        y = y[:, :, :T]
    return y


def init_params(key, z_dim=256, wrench_dim=6):
    """Channel chain matches WrenchDecoderV2: z_dim->128->256->512->1024->wrench_dim.

    ConvTranspose1d(k=1) weight is (Cin, Cout, 1); stored pre-packed as (Cin, Cout).
    """
    chans = [(z_dim, 128), (128, 256), (256, 512), (512, 1024), (1024, wrench_dim)]
    keys = jax.random.split(key, 2 * len(chans))
    params = []
    for i, (ci, co) in enumerate(chans):
        w = 0.05 * jax.random.normal(keys[2 * i], (ci, co), jnp.float32)
        b = 0.05 * jax.random.normal(keys[2 * i + 1], (co,), jnp.float32)
        params.append((w, b))
    return params


def _reference(params, wrench_feature):
    """Plain-JAX f32 per-layer reference (mirrors the PyTorch f32 forward)."""
    B, C, T = wrench_feature.shape
    h = jnp.transpose(wrench_feature, (0, 2, 1)).reshape(B * T, C).astype(jnp.float32)
    for w, b in params:
        h = h @ w.astype(jnp.float32) + b.astype(jnp.float32)
    y = jnp.tanh(h).reshape(B, T, -1)
    return jnp.transpose(y, (0, 2, 1))            # (B, wrench_dim, T)


if __name__ == "__main__":
    Z_DIM, WRENCH_DIM = 256, 6                    # module defaults
    B, T = 2, 64                                  # small batch / sequence

    key = jax.random.PRNGKey(0)
    params = init_params(key, Z_DIM, WRENCH_DIM)
    wrench_feature = jax.random.normal(jax.random.fold_in(key, 123),
                                       (B, Z_DIM, T), jnp.float32)

    out = jax.jit(wrench_decoder_forward)(params, wrench_feature)
    out = jax.block_until_ready(out)

    ref = jax.block_until_ready(_reference(params, wrench_feature))
    assert out.shape == (B, WRENCH_DIM, T), out.shape
    assert bool(jnp.all(jnp.abs(out) <= 1.0))                      # tanh range
    assert bool(jnp.allclose(out, ref, atol=2e-3, rtol=2e-3)), \
        float(jnp.max(jnp.abs(out - ref)))
    print("KERNEL_OK")
</pallas_src>

<mosaic_0001>
module attributes {stable_mosaic.version = 11 : i64} {
  func.func @_wrench_decoder_kernel(%arg0: i32, %arg1: i32, %arg2: memref<1x256x64xf32, #tpu.memory_space<vmem>>, %arg3: memref<6x256xf32, #tpu.memory_space<vmem>>, %arg4: memref<6x1xf32, #tpu.memory_space<vmem>>, %arg5: memref<1x6x64xf32, #tpu.memory_space<vmem>>) attributes {dimension_semantics = [#tpu.dimension_semantics<parallel>, #tpu.dimension_semantics<parallel>], iteration_bounds = array<i64: 2, 1>, scalar_prefetch = 0 : i64, scratch_operands = 0 : i64, tpu.core_type = #tpu.core_type<tc>, window_params = [{transform_indices = @transform_0, window_bounds = array<i64: 1, 256, 64>}, {pipeline_mode = #tpu.pipeline_mode<synchronous>, transform_indices = @transform_1, window_bounds = array<i64: 6, 256>}, {pipeline_mode = #tpu.pipeline_mode<synchronous>, transform_indices = @transform_2, window_bounds = array<i64: 6, 1>}, {transform_indices = @transform_3, window_bounds = array<i64: 1, 6, 64>}]} {
    %c0 = arith.constant 0 : index
    %c0_0 = arith.constant 0 : index
    %c0_1 = arith.constant 0 : index
    %0 = vector.load %arg2[%c0, %c0_0, %c0_1] : memref<1x256x64xf32, #tpu.memory_space<vmem>>, vector<1x256x64xf32>
    %1 = vector.shape_cast %0 : vector<1x256x64xf32> to vector<256x64xf32>
    %c0_2 = arith.constant 0 : index
    %c0_3 = arith.constant 0 : index
    %2 = vector.load %arg3[%c0_2, %c0_3] : memref<6x256xf32, #tpu.memory_space<vmem>>, vector<6x256xf32>
    %cst = arith.constant dense<0.000000e+00> : vector<6x64xf32>
    %3 = tpu.matmul %2, %1, %cst {dimension_numbers = #tpu.dot_dimension_numbers<[1], [0], [0], [1], [0, 0, 1, 1], [], []>} : vector<6x256xf32>, vector<256x64xf32>, vector<6x64xf32> -> vector<6x64xf32>
    %c0_4 = arith.constant 0 : index
    %c0_5 = arith.constant 0 : index
    %4 = vector.load %arg4[%c0_4, %c0_5] : memref<6x1xf32, #tpu.memory_space<vmem>>, vector<6x1xf32>
    %5 = vector.broadcast %4 : vector<6x1xf32> to vector<6x64xf32>
    %6 = arith.addf %3, %5 : vector<6x64xf32>
    %7 = math.tanh %6 : vector<6x64xf32>
    %c0_6 = arith.constant 0 : index
    %c0_7 = arith.constant 0 : index
    %c0_8 = arith.constant 0 : index
    %8 = vector.load %arg5[%c0_6, %c0_7, %c0_8] : memref<1x6x64xf32, #tpu.memory_space<vmem>>, vector<1x6x64xf32>
    %9 = vector.shape_cast %8 : vector<1x6x64xf32> to vector<6x64xf32>
    %10 = vector.shape_cast %7 : vector<6x64xf32> to vector<1x6x64xf32>
    tpu.vector_store %arg5[%c0_6, %c0_7, %c0_8], %10 {strides = array<i32>} : memref<1x6x64xf32, #tpu.memory_space<vmem>>, vector<1x6x64xf32>,
    return
  }
  func.func @transform_0(%arg0: i32, %arg1: i32) -> (i32, i32, i32) {
    %c0_i32 = arith.constant 0 : i32
    %c0_i32_0 = arith.constant 0 : i32
    return %arg0, %c0_i32, %arg1 : i32, i32, i32
  }
  func.func @transform_1(%arg0: i32, %arg1: i32) -> (i32, i32) {
    %c0_i32 = arith.constant 0 : i32
    %c0_i32_0 = arith.constant 0 : i32
    %c0_i32_1 = arith.constant 0 : i32
    return %c0_i32, %c0_i32_0 : i32, i32
  }
  func.func @transform_2(%arg0: i32, %arg1: i32) -> (i32, i32) {
    %c0_i32 = arith.constant 0 : i32
    %c0_i32_0 = arith.constant 0 : i32
    %c0_i32_1 = arith.constant 0 : i32
    return %c0_i32, %c0_i32_0 : i32, i32
  }
  func.func @transform_3(%arg0: i32, %arg1: i32) -> (i32, i32, i32) {
    %c0_i32 = arith.constant 0 : i32
    %c0_i32_0 = arith.constant 0 : i32
    return %arg0, %c0_i32, %arg1 : i32, i32, i32
  }
}

</mosaic_0001>

<bundles_post_ra>
// kernel: wrench_decoder_forward.1
= control target key start
LH: loop header
LB: loop body
LE: loop exit
PB: predicated region body
PF: predicated region fallthrough
CT: control target
= control target key end

     0   :  { %s444_s12 = smov 0   ;;  %s446_s13 = smov 0   ;;  %s524_s0 = inlined_call_operand.vmem [shape: f32[2,256,64], index: 0, kind: input, shape index: {}]   ;;  %s525_s1 = inlined_call_operand.vmem [shape: f32[6,256], index: 1, kind: input, shape index: {}]   ;;  %s526_s2 = inlined_call_operand.vmem [shape: f32[6,1], index: 2, kind: input, shape index: {}]   ;;  %s527_s3 = inlined_call_operand.vmem [shape: f32[2,6,64], index: 3, kind: output, shape index: {}]  }
   0x1   :  { %s448_s14 = smov 0  }
   0x2 LB: > { %s25_s15 = sadd.s32 1, %s417_s13  ;;  %p364_p0 = scmp.ge.s32.totalorder %s421_s14, 1  ;;  %s421_s14 = sphi %s448_s14, %s13_s14   ;;  %s417_s13 = sphi %s446_s13, %s529_s13   ;;  %s413_s12 = sphi %s444_s12, %s528_s12  }
   0x3   : > { %p27_p1 = scmp.ge.s32.totalorder %s25_s15, 2  ;;  %p156_p2 = scmp.lt.s32.totalorder %s421_s14, 3 }
   0x5   : > { %s531_s15 = smov (%p27_p1, %s25_s15), 0  ;;  %p157_p3 = pnand %p364_p0, %p156_p2 }
   0x6   : > { %p185_p4 = scmp.lt.s32.totalorder (!%p157_p3), %s413_s12, 1 }
   0x7   : > { %160 = sbr.rel (%p157_p3) target bundleno = 185 (0xb9), region = 32 }
   0xc   : > { %s533_s12 = smov (!%p185_p4, %s413_s12), 1  ;;  %v423_v6 = vmov 0   ;;  %v234_v15 = vld [vmem:[%s526_s2] sm:$0x3f]  ;;  %v233_v35 = vld [vmem:[%s525_s1 + $0x8] sm:$0x3f] }
   0xd   : > { %s370_s16 = sshll.u32 %s533_s12, 8  ;;  %396 = vset.pattern.permute.xlu0 %v423_v6  ;;  %v232_v34 = vld [vmem:[%s525_s1] sm:$0x3f]  ;;  %s367_s26 = sshll.u32 %s533_s12, 3  ;;  %vm281_vm0 = vcmask 521216  }
   0xe   : > { %s468_s19 = scalar_lea.vmem %s524_s0, %s370_s16  ;;  %237 = vperm.xlu0 %396, %v234_v15   ;;  %s199_s29 = scalar_lea.vmem %s527_s3, %s367_s26 }
   0xf   : > { %v215_v0 = vld [vmem:[%s468_s19 + $0x78] sm:$0xff]  ;;  %v214_v1 = vld [vmem:[%s468_s19 + $0x70] sm:$0xff]  ;;  %v213_v4 = vld [vmem:[%s468_s19 + $0x68] sm:$0xff] }
  0x10   : > { %v231_v2 = vld [vmem:[%s468_s19 + $0xf8] sm:$0xff]  ;;  %240 = vmatpush.msra.mxu0 %v215_v0  ;;  %v230_v3 = vld [vmem:[%s468_s19 + $0xf0] sm:$0xff]  ;;  %v229_v5 = vld [vmem:[%s468_s19 + $0xe8] sm:$0xff] }
  0x11   : > { %260 = vmatpush.msra.mxu1 %v231_v2  ;;  %v212_v7 = vld [vmem:[%s468_s19 + $0x60] sm:$0xff]  ;;  %v211_v9 = vld [vmem:[%s468_s19 + $0x58] sm:$0xff]  ;;  %v210_v11 = vld [vmem:[%s468_s19 + $0x50] sm:$0xff] }
  0x12   : > { %241 = vmatpush.msra.mxu0 %v214_v1  ;;  %v228_v8 = vld [vmem:[%s468_s19 + $0xe0] sm:$0xff]  ;;  %v227_v10 = vld [vmem:[%s468_s19 + $0xd8] sm:$0xff]  ;;  %v226_v12 = vld [vmem:[%s468_s19 + $0xd0] sm:$0xff] }
  0x13   : > { %261 = vmatpush.msra.mxu1 %v230_v3  ;;  %v209_v13 = vld [vmem:[%s468_s19 + $0x48] sm:$0xff]  ;;  %v208_v16 = vld [vmem:[%s468_s19 + $0x40] sm:$0xff]  ;;  %v207_v18 = vld [vmem:[%s468_s19 + $0x38] sm:$0xff] }
  0x14   : > { %242 = vmatpush.msra.mxu0 %v213_v4  ;;  %v225_v14 = vld [vmem:[%s468_s19 + $0xc8] sm:$0xff]  ;;  %v224_v17 = vld [vmem:[%s468_s19 + $0xc0] sm:$0xff]  ;;  %v223_v19 = vld [vmem:[%s468_s19 + $0xb8] sm:$0xff] }
  0x15   : > { %262 = vmatpush.msra.mxu1 %v229_v5  ;;  %v206_v20 = vld [vmem:[%s468_s19 + $0x30] sm:$0xff]  ;;  %v205_v22 = vld [vmem:[%s468_s19 + $0x28] sm:$0xff]  ;;  %v204_v24 = vld [vmem:[%s468_s19 + $0x20] sm:$0xff] }
  0x16   : > { %243 = vmatpush.msra.mxu0 %v212_v7  ;;  %v222_v21 = vld [vmem:[%s468_s19 + $0xb0] sm:$0xff]  ;;  %v221_v23 = vld [vmem:[%s468_s19 + $0xa8] sm:$0xff]  ;;  %v220_v25 = vld [vmem:[%s468_s19 + $0xa0] sm:$0xff] }
  0x17   : > { %263 = vmatpush.msra.mxu1 %v228_v8  ;;  %v203_v26 = vld [vmem:[%s468_s19 + $0x18] sm:$0xff]  ;;  %v202_v28 = vld [vmem:[%s468_s19 + $0x10] sm:$0xff]  ;;  %v201_v30 = vld [vmem:[%s468_s19 + $0x8] sm:$0xff] }
  0x18   : > { %244 = vmatpush.msra.mxu0 %v211_v9  ;;  %v219_v27 = vld [vmem:[%s468_s19 + $0x98] sm:$0xff]  ;;  %v218_v29 = vld [vmem:[%s468_s19 + $0x90] sm:$0xff]  ;;  %v217_v31 = vld [vmem:[%s468_s19 + $0x88] sm:$0xff] }
  0x19   : > { %264 = vmatpush.msra.mxu1 %v227_v10  ;;  %v200_v32 = vld [vmem:[%s468_s19] sm:$0xff] }
  0x1a   : > { %245 = vmatpush.msra.mxu0 %v210_v11  ;;  %v216_v33 = vld [vmem:[%s468_s19 + $0x80] sm:$0xff] }
  0x1b   : > { %265 = vmatpush.msra.mxu1 %v226_v12 }
  0x1c   : > { %246 = vmatpush.msra.mxu0 %v209_v13 }
  0x1d   : > { %266 = vmatpush.msra.mxu1 %v225_v14 }
  0x1e   : > { %247 = vmatpush.msra.mxu0 %v208_v16 }
  0x1f   : > { %267 = vmatpush.msra.mxu1 %v224_v17 }
  0x20   : > { %248 = vmatpush.msra.mxu0 %v207_v18 }
  0x21   : > { %268 = vmatpush.msra.mxu1 %v223_v19 }
  0x22   : > { %249 = vmatpush.msra.mxu0 %v206_v20 }
  0x23   : > { %269 = vmatpush.msra.mxu1 %v222_v21 }
  0x24   : > { %250 = vmatpush.msra.mxu0 %v205_v22 }
  0x25   : > { %270 = vmatpush.msra.mxu1 %v221_v23 }
  0x26   : > { %251 = vmatpush.msra.mxu0 %v204_v24 }
  0x27   : > { %271 = vmatpush.msra.mxu1 %v220_v25 }
  0x28   : > { %252 = vmatpush.msra.mxu0 %v203_v26 }
  0x29   : > { %272 = vmatpush.msra.mxu1 %v219_v27 }
  0x2a   : > { %253 = vmatpush.msra.mxu0 %v202_v28 }
  0x2b   : > { %273 = vmatpush.msra.mxu1 %v218_v29 }
  0x2c   : > { %254 = vmatpush.msra.mxu0 %v201_v30 }
  0x2d   : > { %274 = vmatpush.msra.mxu1 %v217_v31 }
  0x2e   : > { %255 = vmatpush.msra.mxu0 %v200_v32 }
  0x2f   : > { %275 = vmatpush.msra.mxu1 %v216_v33  ;;  %256 = vmatmul.f32.vlgmr.msra.gmra.mxu0 %v232_v34 }
  0x30   : > { %276 = vmatmul.f32.vlgmr.msra.gmra.mxu1 %v233_v35 }
  0x80   : > { %v238_v36 = vpop.permute.xlu0 %237 }
  0xac   : > { %v257_v37 = vpop.f32.mrf.mxu0 }
  0xad   : > { %v277_v38 = vpop.f32.mrf.mxu1  ;;  %v258_v39 = vadd.f32 %v257_v37, %v238_v36 }
  0xaf   : > { %v278_v40 = vadd.f32 %v277_v38, %v258_v39 }
  0xb1   : > { %397 = vtanh.f32 %v278_v40 }
  0xb7   : > { %v398_v41 = vpop.eup %397 }
  0xb8   : > { %282 = vst.msk [vmem:[%s199_s29] sm:$0x3f] %vm281_vm0, %v398_v41 }
  0xb9 PF: > { %s13_s14 = sadd.s32 1, %s421_s14   ;;  %s528_s12 = smov %s417_s13 }
  0xba   : > { %p10_p5 = scmp.ge.s32.totalorder %s13_s14, 4   ;;  %s529_s13 = smov %s531_s15 }
  0xbc   :  { %12 = sbr.rel (!%p10_p5) target bundleno = 2 (0x2), region = 62 }

</bundles_post_ra>
